<compile_context>
chip_gen: v7x
topology: tpu7x:2x2x1
jax: 0.10.0
libtpu: 0.0.40
codegen_flags: <defaults>
</compile_context>

<pallas_src>
import functools

import jax
import jax.numpy as jnp
from jax.experimental import pallas as pl
from jax.experimental.pallas import tpu as pltpu

EPS = 1e-5


# ----------------------------- Pallas kernels ------------------------------

def matmul_stats_kernel(x_ref, w_ref, y_ref, stats_ref, sum_ref, sq_ref, *, m_total):
    """One M-tile of Y = X @ W (bf16 operands, f32 accumulate) + single-pass BN stats.

    x_ref:     (tm, K)      bf16
    w_ref:     (K, Cout)    bf16   (resident across the grid: constant index_map)
    y_ref:     (tm, Cout)   f32    raw conv output tile
    stats_ref: (2, Cout)    f32    [mean; rstd], written at the last grid step
    sum_ref / sq_ref: (1, Cout) f32 VMEM scratch, persist across grid steps
    """
    i = pl.program_id(0)

    @pl.when(i == 0)
    def _init():
        sum_ref[...] = jnp.zeros_like(sum_ref)
        sq_ref[...] = jnp.zeros_like(sq_ref)

    y = jnp.dot(x_ref[...], w_ref[...], preferred_element_type=jnp.float32)
    y_ref[...] = y
    # Single-pass statistics: sum and sum-of-squares (one traversal of the tile).
    sum_ref[...] += jnp.sum(y, axis=0, keepdims=True)
    sq_ref[...] += jnp.sum(y * y, axis=0, keepdims=True)

    @pl.when(i == pl.num_programs(0) - 1)
    def _finalize():
        inv_m = 1.0 / m_total
        mean = sum_ref[...] * inv_m
        var = jnp.maximum(sq_ref[...] * inv_m - mean * mean, 0.0)
        stats_ref[0:1, :] = mean
        stats_ref[1:2, :] = jax.lax.rsqrt(var + EPS)


def bn_act_kernel(y_ref, stats_ref, gamma_ref, beta_ref, o_ref, *, relu):
    """Normalize one M-tile with global stats; optional ReLU. All math in f32."""
    mean = stats_ref[0:1, :]
    scale = stats_ref[1:2, :] * gamma_ref[...]
    y = (y_ref[...] - mean) * scale + beta_ref[...]
    if relu:
        y = jnp.maximum(y, 0.0)
    o_ref[...] = y.astype(o_ref.dtype)


def bn_add_relu_kernel(y3_ref, s3_ref, g3_ref, b3_ref,
                       ysc_ref, ssc_ref, gsc_ref, bsc_ref, o_ref):
    """Fused bn3 + bn_shortcut + residual add + ReLU on one M-tile."""
    y3 = (y3_ref[...] - s3_ref[0:1, :]) * (s3_ref[1:2, :] * g3_ref[...]) + b3_ref[...]
    sc = (ysc_ref[...] - ssc_ref[0:1, :]) * (ssc_ref[1:2, :] * gsc_ref[...]) + bsc_ref[...]
    o_ref[...] = jnp.maximum(y3 + sc, 0.0)


# ----------------------------- pallas_call wrappers --------------------------

def _choose_tm(m):
    # Large row tiles for DMA/compute overlap; all candidates are multiples of 16
    # (bf16 sublane packing) and sized so a double-buffered step stays well under
    # v7x's 32 MiB scoped VMEM.  Toy shapes divide evenly; fall back to full M.
    for t in (256, 128, 64, 32, 16):
        if m % t == 0:
            return t
    return m


def matmul_stats_call(x, w, *, tm):
    m, k = x.shape
    cout = w.shape[1]
    row = lambda i: (i, 0)
    rep = lambda i: (0, 0)
    return pl.pallas_call(
        functools.partial(matmul_stats_kernel, m_total=float(m)),
        out_shape=(jax.ShapeDtypeStruct((m, cout), jnp.float32),
                   jax.ShapeDtypeStruct((2, cout), jnp.float32)),
        grid=(m // tm,),
        in_specs=[pl.BlockSpec((tm, k), row),
                  pl.BlockSpec((k, cout), rep)],
        out_specs=(pl.BlockSpec((tm, cout), row),
                   pl.BlockSpec((2, cout), rep)),
        scratch_shapes=[pltpu.VMEM((1, cout), jnp.float32),
                        pltpu.VMEM((1, cout), jnp.float32)],
        # Stats accumulate across the M grid -> reduction axis.
        compiler_params=pltpu.CompilerParams(dimension_semantics=("arbitrary",)),
    )(x, w)


def bn_act_call(y, stats, gamma, beta, *, tm, relu, out_dtype):
    m, cout = y.shape
    row = lambda i: (i, 0)
    rep = lambda i: (0, 0)
    return pl.pallas_call(
        functools.partial(bn_act_kernel, relu=relu),
        out_shape=jax.ShapeDtypeStruct((m, cout), out_dtype),
        grid=(m // tm,),
        in_specs=[pl.BlockSpec((tm, cout), row),
                  pl.BlockSpec((2, cout), rep),
                  pl.BlockSpec((1, cout), rep),
                  pl.BlockSpec((1, cout), rep)],
        out_specs=pl.BlockSpec((tm, cout), row),
        # Pure per-row work -> megacore-parallel on v7x.
        compiler_params=pltpu.CompilerParams(dimension_semantics=("parallel",)),
    )(y, stats, gamma.reshape(1, -1), beta.reshape(1, -1))


def bn_add_relu_call(y3, s3, g3, b3, ysc, ssc, gsc, bsc, *, tm):
    m, cout = y3.shape
    row = lambda i: (i, 0)
    rep = lambda i: (0, 0)
    return pl.pallas_call(
        bn_add_relu_kernel,
        out_shape=jax.ShapeDtypeStruct((m, cout), jnp.float32),
        grid=(m // tm,),
        in_specs=[pl.BlockSpec((tm, cout), row),
                  pl.BlockSpec((2, cout), rep),
                  pl.BlockSpec((1, cout), rep),
                  pl.BlockSpec((1, cout), rep),
                  pl.BlockSpec((tm, cout), row),
                  pl.BlockSpec((2, cout), rep),
                  pl.BlockSpec((1, cout), rep),
                  pl.BlockSpec((1, cout), rep)],
        out_specs=pl.BlockSpec((tm, cout), row),
        compiler_params=pltpu.CompilerParams(dimension_semantics=("parallel",)),
    )(y3, s3, g3.reshape(1, -1), b3.reshape(1, -1),
      ysc, ssc, gsc.reshape(1, -1), bsc.reshape(1, -1))


# ------------------------------ JAX glue -------------------------------------

def _make_taps3x3_folded(x_nhwc, stride):
    """im2col with taps folded into the channel (K) axis: (N*Ho*Wo, 9*C)."""
    n, h, w, c = x_nhwc.shape
    ho = (h + 2 - 3) // stride + 1
    wo = (w + 2 - 3) // stride + 1
    xp = jnp.pad(x_nhwc, ((0, 0), (1, 1), (1, 1), (0, 0)))
    cols = []
    for dy in range(3):
        for dx in range(3):
            sl = xp[:,
                    dy:dy + (ho - 1) * stride + 1:stride,
                    dx:dx + (wo - 1) * stride + 1:stride, :]
            cols.append(sl.reshape(n * ho * wo, c))
    return jnp.concatenate(cols, axis=-1), (n, ho, wo)


def bottleneck_flexi_forward(x_nchw, params, stride):
    """Pallas implementation of Bottleneck_flexi.forward (shortcut=True, width=None)."""
    x = jnp.transpose(x_nchw, (0, 2, 3, 1)).astype(jnp.float32)  # NCHW -> NHWC
    n, h, w, cin = x.shape
    planes = params["w1"].shape[-1]
    cexp = params["w3"].shape[-1]

    # --- conv1 (1x1) + bn1 + relu1 : full resolution ---
    m0 = n * h * w
    tm0 = _choose_tm(m0)
    x_flat = x.reshape(m0, cin).astype(jnp.bfloat16)
    y1, s1 = matmul_stats_call(x_flat, params["w1"].astype(jnp.bfloat16), tm=tm0)
    out1 = bn_act_call(y1, s1, params["g1"], params["b1"],
                       tm=tm0, relu=True, out_dtype=jnp.bfloat16)
    out1_nhwc = out1.reshape(n, h, w, planes)

    # --- conv2 (3x3, stride) + bn2 + relu2 : im2col folded into K = 9*planes ---
    taps2, (_, ho, wo) = _make_taps3x3_folded(out1_nhwc, stride)
    m = n * ho * wo
    tm = _choose_tm(m)
    w2 = params["w2"].reshape(9 * planes, planes).astype(jnp.bfloat16)
    y2, s2 = matmul_stats_call(taps2, w2, tm=tm)
    out2 = bn_act_call(y2, s2, params["g2"], params["b2"],
                       tm=tm, relu=True, out_dtype=jnp.bfloat16)      # (m, planes)

    # --- conv3 (1x1) and shortcut (1x1, stride): raw conv outputs + stats ---
    y3, s3 = matmul_stats_call(out2, params["w3"].astype(jnp.bfloat16), tm=tm)
    xs = x[:, ::stride, ::stride, :].reshape(m, cin).astype(jnp.bfloat16)
    ysc, ssc = matmul_stats_call(xs, params["wsc"].astype(jnp.bfloat16), tm=tm)

    # --- bn3 + bn_shortcut + add + relu3 (fused) ---
    out = bn_add_relu_call(y3, s3, params["g3"], params["b3"],
                           ysc, ssc, params["gsc"], params["bsc"], tm=tm)
    return jnp.transpose(out.reshape(n, ho, wo, cexp), (0, 3, 1, 2))  # NHWC -> NCHW


# --------------------------- pure-JAX reference -------------------------------

def _ref_bn(y, g, b):
    mean = jnp.mean(y, axis=(0, 1, 2))
    var = jnp.mean((y - mean) ** 2, axis=(0, 1, 2))
    return (y - mean) * jax.lax.rsqrt(var + EPS) * g + b


def reference_forward(x_nchw, params, stride):
    x = jnp.transpose(x_nchw, (0, 2, 3, 1)).astype(jnp.float32)
    dn = ("NHWC", "HWIO", "NHWC")
    hp = jax.lax.Precision.HIGHEST
    y1 = jax.lax.conv_general_dilated(x, params["w1"][None, None], (1, 1), "VALID",
                                      dimension_numbers=dn, precision=hp)
    y1 = jnp.maximum(_ref_bn(y1, params["g1"], params["b1"]), 0.0)
    y2 = jax.lax.conv_general_dilated(y1, params["w2"], (stride, stride),
                                      ((1, 1), (1, 1)), dimension_numbers=dn,
                                      precision=hp)
    y2 = jnp.maximum(_ref_bn(y2, params["g2"], params["b2"]), 0.0)
    y3 = jax.lax.conv_general_dilated(y2, params["w3"][None, None], (1, 1), "VALID",
                                      dimension_numbers=dn, precision=hp)
    y3 = _ref_bn(y3, params["g3"], params["b3"])
    sc = jax.lax.conv_general_dilated(x, params["wsc"][None, None], (stride, stride),
                                      "VALID", dimension_numbers=dn, precision=hp)
    sc = _ref_bn(sc, params["gsc"], params["bsc"])
    out = jnp.maximum(y3 + sc, 0.0)
    return jnp.transpose(out, (0, 3, 1, 2))


# ---------------------------------- main --------------------------------------

if __name__ == "__main__":
    N, Cin, H, W = 2, 16, 16, 16
    planes = 8
    expansion = 4
    cexp = expansion * planes
    stride = 2

    key = jax.random.PRNGKey(0)
    ks = jax.random.split(key, 13)

    params = {
        "w1":  jax.random.normal(ks[0], (Cin, planes), jnp.float32) * 0.2,
        "g1":  1.0 + 0.1 * jax.random.normal(ks[1], (planes,), jnp.float32),
        "b1":  0.1 * jax.random.normal(ks[2], (planes,), jnp.float32),
        "w2":  jax.random.normal(ks[3], (3, 3, planes, planes), jnp.float32) * 0.2,
        "g2":  1.0 + 0.1 * jax.random.normal(ks[4], (planes,), jnp.float32),
        "b2":  0.1 * jax.random.normal(ks[5], (planes,), jnp.float32),
        "w3":  jax.random.normal(ks[6], (planes, cexp), jnp.float32) * 0.2,
        "g3":  1.0 + 0.1 * jax.random.normal(ks[7], (cexp,), jnp.float32),
        "b3":  0.1 * jax.random.normal(ks[8], (cexp,), jnp.float32),
        "wsc": jax.random.normal(ks[9], (Cin, cexp), jnp.float32) * 0.2,
        "gsc": 1.0 + 0.1 * jax.random.normal(ks[10], (cexp,), jnp.float32),
        "bsc": 0.1 * jax.random.normal(ks[11], (cexp,), jnp.float32),
    }

    x = jax.random.normal(ks[12], (N, Cin, H, W), jnp.float32)

    out = jax.block_until_ready(bottleneck_flexi_forward(x, params, stride))
    ref = jax.block_until_ready(reference_forward(x, params, stride))

    assert out.shape == (N, cexp, H // stride, W // stride), out.shape
    # Tolerance accounts for bf16 matmul operands / bf16 intermediate activations
    # (per perf review) vs. the f32-HIGHEST reference; real bugs produce O(1) errors.
    max_err = float(jnp.max(jnp.abs(out - ref)))
    assert max_err < 1e-1, f"max abs error {max_err}"

    print("KERNEL_OK")
</pallas_src>

<mosaic_0001>
module attributes {stable_mosaic.version = 11 : i64} {
  func.func @matmul_stats_kernel(%arg0: i32, %arg1: memref<256x16xbf16, #tpu.memory_space<vmem>>, %arg2: memref<16x8xbf16, #tpu.memory_space<vmem>>, %arg3: memref<256x8xf32, #tpu.memory_space<vmem>>, %arg4: memref<2x8xf32, #tpu.memory_space<vmem>>, %arg5: memref<1x8xf32, #tpu.memory_space<vmem>>, %arg6: memref<1x8xf32, #tpu.memory_space<vmem>>) attributes {dimension_semantics = [#tpu.dimension_semantics<arbitrary>], iteration_bounds = array<i64: 2>, scalar_prefetch = 0 : i64, scratch_operands = 2 : i64, tpu.core_type = #tpu.core_type<tc>, window_params = [{transform_indices = @transform_0, window_bounds = array<i64: 256, 16>}, {pipeline_mode = #tpu.pipeline_mode<synchronous>, transform_indices = @transform_1, window_bounds = array<i64: 16, 8>}, {transform_indices = @transform_2, window_bounds = array<i64: 256, 8>}, {pipeline_mode = #tpu.pipeline_mode<synchronous>, transform_indices = @transform_3, window_bounds = array<i64: 2, 8>}]} {
    %c0_i32 = arith.constant 0 : i32
    %0 = arith.cmpi eq, %arg0, %c0_i32 : i32
    %1 = arith.extui %0 : i1 to i32
    %c0_i32_0 = arith.constant 0 : i32
    %2 = arith.cmpi ne, %1, %c0_i32_0 : i32
    scf.if %2 {
      %cst_17 = arith.constant 0.000000e+00 : f32
      %21 = vector.broadcast %cst_17 : f32 to vector<1x8xf32>
      %c0_18 = arith.constant 0 : index
      %c0_19 = arith.constant 0 : index
      %22 = vector.load %arg5[%c0_18, %c0_19] : memref<1x8xf32, #tpu.memory_space<vmem>>, vector<1x8xf32>
      tpu.vector_store %arg5[%c0_18, %c0_19], %21 {strides = array<i32>} : memref<1x8xf32, #tpu.memory_space<vmem>>, vector<1x8xf32>,
      %cst_20 = arith.constant 0.000000e+00 : f32
      %23 = vector.broadcast %cst_20 : f32 to vector<1x8xf32>
      %c0_21 = arith.constant 0 : index
      %c0_22 = arith.constant 0 : index
      %24 = vector.load %arg6[%c0_21, %c0_22] : memref<1x8xf32, #tpu.memory_space<vmem>>, vector<1x8xf32>
      tpu.vector_store %arg6[%c0_21, %c0_22], %23 {strides = array<i32>} : memref<1x8xf32, #tpu.memory_space<vmem>>, vector<1x8xf32>,
    } else {
    }
    %c0 = arith.constant 0 : index
    %c0_1 = arith.constant 0 : index
    %3 = vector.load %arg1[%c0, %c0_1] : memref<256x16xbf16, #tpu.memory_space<vmem>>, vector<256x16xbf16>
    %c0_2 = arith.constant 0 : index
    %c0_3 = arith.constant 0 : index
    %4 = vector.load %arg2[%c0_2, %c0_3] : memref<16x8xbf16, #tpu.memory_space<vmem>>, vector<16x8xbf16>
    %cst = arith.constant dense<0.000000e+00> : vector<256x8xf32>
    %5 = tpu.matmul %3, %4, %cst {dimension_numbers = #tpu.dot_dimension_numbers<[1], [0], [0], [1], [0, 0, 1, 1], [], []>} : vector<256x16xbf16>, vector<16x8xbf16>, vector<256x8xf32> -> vector<256x8xf32>
    %c0_4 = arith.constant 0 : index
    %c0_5 = arith.constant 0 : index
    %6 = vector.load %arg3[%c0_4, %c0_5] : memref<256x8xf32, #tpu.memory_space<vmem>>, vector<256x8xf32>
    tpu.vector_store %arg3[%c0_4, %c0_5], %5 {strides = array<i32>} : memref<256x8xf32, #tpu.memory_space<vmem>>, vector<256x8xf32>,
    %c0_6 = arith.constant 0 : index
    %c0_7 = arith.constant 0 : index
    %7 = vector.load %arg5[%c0_6, %c0_7] : memref<1x8xf32, #tpu.memory_space<vmem>>, vector<1x8xf32>
    %cst_8 = arith.constant dense<0.000000e+00> : vector<8xf32>
    %8 = vector.multi_reduction <add>, %5, %cst_8 [0] : vector<256x8xf32> to vector<8xf32>
    %9 = vector.shape_cast %8 : vector<8xf32> to vector<1x8xf32>
    %10 = arith.addf %7, %9 : vector<1x8xf32>
    %c0_9 = arith.constant 0 : index
    %c0_10 = arith.constant 0 : index
    %11 = vector.load %arg5[%c0_9, %c0_10] : memref<1x8xf32, #tpu.memory_space<vmem>>, vector<1x8xf32>
    tpu.vector_store %arg5[%c0_9, %c0_10], %10 {strides = array<i32>} : memref<1x8xf32, #tpu.memory_space<vmem>>, vector<1x8xf32>,
    %c0_11 = arith.constant 0 : index
    %c0_12 = arith.constant 0 : index
    %12 = vector.load %arg6[%c0_11, %c0_12] : memref<1x8xf32, #tpu.memory_space<vmem>>, vector<1x8xf32>
    %13 = arith.mulf %5, %5 : vector<256x8xf32>
    %cst_13 = arith.constant dense<0.000000e+00> : vector<8xf32>
    %14 = vector.multi_reduction <add>, %13, %cst_13 [0] : vector<256x8xf32> to vector<8xf32>
    %15 = vector.shape_cast %14 : vector<8xf32> to vector<1x8xf32>
    %16 = arith.addf %12, %15 : vector<1x8xf32>
    %c0_14 = arith.constant 0 : index
    %c0_15 = arith.constant 0 : index
    %17 = vector.load %arg6[%c0_14, %c0_15] : memref<1x8xf32, #tpu.memory_space<vmem>>, vector<1x8xf32>
    tpu.vector_store %arg6[%c0_14, %c0_15], %16 {strides = array<i32>} : memref<1x8xf32, #tpu.memory_space<vmem>>, vector<1x8xf32>,
    %c1_i32 = arith.constant 1 : i32
    %18 = arith.cmpi eq, %arg0, %c1_i32 : i32
    %19 = arith.extui %18 : i1 to i32
    %c0_i32_16 = arith.constant 0 : i32
    %20 = arith.cmpi ne, %19, %c0_i32_16 : i32
    scf.if %20 {
      %c0_17 = arith.constant 0 : index
      %c0_18 = arith.constant 0 : index
      %21 = vector.load %arg5[%c0_17, %c0_18] : memref<1x8xf32, #tpu.memory_space<vmem>>, vector<1x8xf32>
      %cst_19 = arith.constant 0.001953125 : f32
      %22 = vector.broadcast %cst_19 : f32 to vector<1x8xf32>
      %23 = arith.mulf %21, %22 : vector<1x8xf32>
      %c0_20 = arith.constant 0 : index
      %c0_21 = arith.constant 0 : index
      %24 = vector.load %arg6[%c0_20, %c0_21] : memref<1x8xf32, #tpu.memory_space<vmem>>, vector<1x8xf32>
      %cst_22 = arith.constant 0.001953125 : f32
      %25 = vector.broadcast %cst_22 : f32 to vector<1x8xf32>
      %26 = arith.mulf %24, %25 : vector<1x8xf32>
      %27 = arith.mulf %23, %23 : vector<1x8xf32>
      %28 = arith.subf %26, %27 : vector<1x8xf32>
      %cst_23 = arith.constant 0.000000e+00 : f32
      %29 = vector.broadcast %cst_23 : f32 to vector<1x8xf32>
      %30 = arith.maximumf %28, %29 : vector<1x8xf32>
      %c0_24 = arith.constant 0 : index
      %c0_25 = arith.constant 0 : index
      %31 = vector.load %arg4[%c0_24, %c0_25] : memref<2x8xf32, #tpu.memory_space<vmem>>, vector<1x8xf32>
      tpu.vector_store %arg4[%c0_24, %c0_25], %23 {strides = array<i32>} : memref<2x8xf32, #tpu.memory_space<vmem>>, vector<1x8xf32>,
      %cst_26 = arith.constant 9.99999974E-6 : f32
      %32 = vector.broadcast %cst_26 : f32 to vector<1x8xf32>
      %33 = arith.addf %30, %32 : vector<1x8xf32>
      %34 = math.rsqrt %33 : vector<1x8xf32>
      %c1 = arith.constant 1 : index
      %c0_27 = arith.constant 0 : index
      %35 = vector.load %arg4[%c1, %c0_27] : memref<2x8xf32, #tpu.memory_space<vmem>>, vector<1x8xf32>
      tpu.vector_store %arg4[%c1, %c0_27], %34 {strides = array<i32>} : memref<2x8xf32, #tpu.memory_space<vmem>>, vector<1x8xf32>,
    } else {
    }
    return
  }
  func.func @transform_0(%arg0: i32) -> (i32, i32) {
    %c0_i32 = arith.constant 0 : i32
    %c0_i32_0 = arith.constant 0 : i32
    return %arg0, %c0_i32 : i32, i32
  }
  func.func @transform_1(%arg0: i32) -> (i32, i32) {
    %c0_i32 = arith.constant 0 : i32
    %c0_i32_0 = arith.constant 0 : i32
    %c0_i32_1 = arith.constant 0 : i32
    return %c0_i32, %c0_i32_0 : i32, i32
  }
  func.func @transform_2(%arg0: i32) -> (i32, i32) {
    %c0_i32 = arith.constant 0 : i32
    %c0_i32_0 = arith.constant 0 : i32
    return %arg0, %c0_i32 : i32, i32
  }
  func.func @transform_3(%arg0: i32) -> (i32, i32) {
    %c0_i32 = arith.constant 0 : i32
    %c0_i32_0 = arith.constant 0 : i32
    %c0_i32_1 = arith.constant 0 : i32
    return %c0_i32, %c0_i32_0 : i32, i32
  }
}

</mosaic_0001>

<bundles_post_ra>
// kernel: tpu_custom_call.1
= control target key start
LH: loop header
LB: loop body
LE: loop exit
PB: predicated region body
PF: predicated region fallthrough
CT: control target
= control target key end

     0   :  { %9 = vsyncpa [#allocation5], 0  ;;  %s1012_s12 = smov 0   ;;  %s1327_s0 = inlined_call_operand.vmem [shape: bf16[512,16], index: 0, kind: input, shape index: {}]   ;;  %s1328_s1 = inlined_call_operand.vmem [shape: bf16[16,8], index: 1, kind: input, shape index: {}]   ;;  %s1329_s2 = inlined_call_operand.vmem [shape: f32[512,8], index: 2, kind: output, shape index: {0}]   ;;  %s1330_s3 = inlined_call_operand.hbm [shape: f32[2,8], index: 3, kind: output, shape index: {1}]  }
   0x1 LB: > { %s1018_s13 = sadd.s32 4294967295, %s988_s12   ;;  %p820_p0 = scmp.ge.s32.totalorder %s988_s12, 1  ;;  %s988_s12 = sphi %s1012_s12, %s15_s12  }
   0x2   : > { %p137_p1 = scmp.lt.s32.totalorder %s988_s12, 3 }
   0x4   : > { %p138_p2 = pnand %p820_p0, %p137_p1 }
   0x5   : > { %s821_s14 = sshll.u32 (!%p138_p2), %s1018_s13, 5  ;;  %p825_p4 = scmp.ne.s32.totalorder (!%p138_p2), %s1018_s13, 0 }
   0x6   : > { %141 = sbr.rel (%p138_p2) target bundleno = 372 (0x174), region = 28  ;;  %p162_p3 = scmp.lt.s32.totalorder (!%p138_p2), %s821_s14, 63 }
   0xd   : > { %s1332_s14 = smov (!%p162_p3, %s821_s14), 63  ;;  %177 = sbr.rel (%p825_p4) target bundleno = 20 (0x14), region = 32 }
   0xe   : > { %s822_s15 = sshll.u32 %s1332_s14, 2  ;;  %s824_s16 = sshll.u32 %s1332_s14, 3  ;;  %vm178_vm0 = vcmask (!%p825_p4), 57344   ;;  %v990_v0 = vmov (!%p825_p4), 0.0  }
   0xf   : > { %s1026_s19 = scalar_lea.vmem %s1327_s0, %s822_s15  ;;  %s1031_s22 = scalar_lea.vmem %s1329_s2, %s824_s16  ;;  %179 = vst.msk [vmem:[#allocation2] sm:$0x1] (!%p825_p4), %vm178_vm0, %v990_v0  ;;  %180 = vst.msk [vmem:[#allocation3] sm:$0x1] (!%p825_p4), %vm178_vm0, %v990_v0 }
  0x14 PF: > { %v933_v1 = vld [vmem:[%s1328_s1] sm:$0xff]   ;;  %vm301_vm1 = vcmask 130048   ;;  %v935_v3 = vld [vmem:[%s1026_s19 + $0x8] sm:$0xff]   ;;  %v936_v4 = vld [vmem:[%s1026_s19 + $0x10] sm:$0xff]   ;;  %vm511_vm2 = vcmask 64512   ;;  %vm615_vm3 = vcmask 57344  }
  0x15   : > { %v934_v2 = vld [vmem:[%s1026_s19] sm:$0xff]   ;;  %881 = vmatprep.subr.bf16.mxu0 %v933_v1  ;;  %915 = vmatprep.subr.bf16.mxu1 %v933_v1  ;;  %v937_v5 = vld [vmem:[%s1026_s19 + $0x18] sm:$0xff]   ;;  %v943_v8 = vld [vmem:[%s1026_s19 + $0x48] sm:$0xff]   ;;  %p859_p5 = scmp.ne.s32.totalorder %s1018_s13, 1 }
  0x16   : > { %882 = vmatpush3.bf16.msra.mxu0 %v933_v1  ;;  %883 = vmatprep.mubr.msk.bf16.mxu0 %vm301_vm1, %v934_v2  ;;  %v938_v6 = vld [vmem:[%s1026_s19 + $0x20] sm:$0xff]   ;;  %v944_v9 = vld [vmem:[%s1026_s19 + $0x50] sm:$0xff]   ;;  %v945_v10 = vld [vmem:[%s1026_s19 + $0x58] sm:$0xff]  }
  0x17   : > { %916 = vmatpush3.bf16.msra.mxu1 %v933_v1  ;;  %v942_v7 = vld [vmem:[%s1026_s19 + $0x40] sm:$0xff]   ;;  %v939_v12 = vld [vmem:[%s1026_s19 + $0x28] sm:$0xff]   ;;  %v940_v13 = vld [vmem:[%s1026_s19 + $0x30] sm:$0xff]  }
  0x18   : > { %899 = vmatprep.mubr.msk.bf16.mxu1 %vm301_vm1, %v942_v7  ;;  %v946_v11 = vld [vmem:[%s1026_s19 + $0x60] sm:$0xff]   ;;  %v947_v14 = vld [vmem:[%s1026_s19 + $0x68] sm:$0xff]   ;;  %v948_v15 = vld [vmem:[%s1026_s19 + $0x70] sm:$0xff]  }
  0x19   : > { %884 = vmatmul.mubr.msk.bf16.vlgmr.msra.gmra.mrb[0].mxu0 %vm301_vm1, %v935_v3  ;;  %v941_v16 = vld [vmem:[%s1026_s19 + $0x38] sm:$0xff]  }
  0x1a   : > { %887 = vmatprep.mubr.msk.bf16.mxu0 %vm301_vm1, %v936_v4  ;;  %900 = vmatmul.mubr.msk.bf16.vlgmr.msra.gmra.mrb[0].mxu1 %vm301_vm1, %v943_v8  ;;  %v949_v17 = vld [vmem:[%s1026_s19 + $0x78] sm:$0xff]  }
  0x1b   : > { %903 = vmatprep.mubr.msk.bf16.mxu1 %vm301_vm1, %v944_v9 }
  0x21   : > { %888 = vmatmul.mubr.msk.bf16.gmra.mrb[4].mxu0 %vm301_vm1, %v937_v5 }
  0x22   : > { %891 = vmatprep.mubr.msk.bf16.mxu0 %vm301_vm1, %v938_v6  ;;  %904 = vmatmul.mubr.msk.bf16.gmra.mrb[4].mxu1 %vm301_vm1, %v945_v10 }
  0x23   : > { %907 = vmatprep.mubr.msk.bf16.mxu1 %vm301_vm1, %v946_v11 }
  0x29   : > { %892 = vmatmul.mubr.msk.bf16.gmra.mrb[8].mxu0 %vm301_vm1, %v939_v12 }
  0x2a   : > { %895 = vmatprep.mubr.msk.bf16.mxu0 %vm301_vm1, %v940_v13  ;;  %908 = vmatmul.mubr.msk.bf16.gmra.mrb[8].mxu1 %vm301_vm1, %v947_v14 }
  0x2b   : > { %911 = vmatprep.mubr.msk.bf16.mxu1 %vm301_vm1, %v948_v15 }
  0x31   : > { %896 = vmatmul.mubr.msk.bf16.gmra.mrb[12].mxu0 %vm301_vm1, %v941_v16 }
  0x32   : > { %912 = vmatmul.mubr.msk.bf16.gmra.mrb[12].mxu1 %vm301_vm1, %v949_v17 }
  0xec   : > { %v885_v18 = vpop.f32.mrb[0].mxu0 }
  0xed   : > { %514 = vst.msk [vmem:[%s1031_s22 + $0x10] sm:$0xff] %vm511_vm2, %v885_v18  ;;  %v384_v19 = vpop.f32.mrb[1].mxu0  ;;  %v620_v23 = vmul.f32 %v885_v18, %v885_v18  ;;  %v548_v28 = vsel %vm511_vm2, %v885_v18, 0.0  ;;  %v1082_v32 = vpop.f32.mrb[0].mxu1 }
  0xee   : > { %512 = vst.msk [vmem:[%s1031_s22] sm:$0xff] %vm511_vm2, %v384_v19  ;;  %v618_v20 = vmul.f32 %v384_v19, %v384_v19  ;;  %v886_v21 = vpop.f32.mrb[2].mxu0  ;;  %v545_v24 = vsel %vm511_vm2, %v384_v19, 0.0  ;;  %530 = vst.msk [vmem:[%s1031_s22 + $0x90] sm:$0xff] %vm511_vm2, %v1082_v32  ;;  %v1087_v35 = vpop.f32.mrb[1].mxu1 }
  0xef   : > { %515 = vst.msk [vmem:[%s1031_s22 + $0x18] sm:$0xff] %vm511_vm2, %v886_v21  ;;  %v387_v22 = vpop.f32.mrb[3].mxu0  ;;  %v621_v30 = vmul.f32 %v886_v21, %v886_v21  ;;  %v653_v36 = vsel %vm511_vm2, %v620_v23, 0.0  ;;  %v550_v37 = vsel %vm511_vm2, %v886_v21, 0.0  ;;  %528 = vst.msk [vmem:[%s1031_s22 + $0x80] sm:$0xff] %vm511_vm2, %v1087_v35  ;;  %v1094_v39 = vpop.f32.mrb[2].mxu1 }
  0xf0   : > { %513 = vst.msk [vmem:[%s1031_s22 + $0x8] sm:$0xff] %vm511_vm2, %v387_v22  ;;  %v546_v25 = vsel %vm511_vm2, %v387_v22, 0.0  ;;  %v619_v26 = vmul.f32 %v387_v22, %v387_v22  ;;  %v650_v29 = vsel %vm511_vm2, %v618_v20, 0.0  ;;  %531 = vst.msk [vmem:[%s1031_s22 + $0x98] sm:$0xff] %vm511_vm2, %v1094_v39  ;;  %v1101_v43 = vpop.f32.mrb[3].mxu1 }
  0xf1   : > { %v547_v27 = vadd.f32 %v546_v25, %v545_v24  ;;  %v655_v44 = vsel %vm511_vm2, %v621_v30, 0.0  ;;  %529 = vst.msk [vmem:[%s1031_s22 + $0x88] sm:$0xff] %vm511_vm2, %v1101_v43 }
  0xf2   : > { %v651_v31 = vsel %vm511_vm2, %v619_v26, 0.0 }
  0xf3   : > { %v549_v33 = vadd.f32 %v548_v28, %v547_v27  ;;  %v652_v34 = vadd.f32 %v651_v31, %v650_v29 }
  0xf4   : > { %v889_v38 = vpop.f32.mrb[4].mxu0 }
  0xf5   : > { %v654_v40 = vadd.f32 %v653_v36, %v652_v34  ;;  %518 = vst.msk [vmem:[%s1031_s22 + $0x30] sm:$0xff] %vm511_vm2, %v889_v38  ;;  %v400_v41 = vpop.f32.mrb[5].mxu0  ;;  %v551_v42 = vadd.f32 %v550_v37, %v549_v33  ;;  %v624_v51 = vmul.f32 %v889_v38, %v889_v38  ;;  %v556_v57 = vsel %vm511_vm2, %v889_v38, 0.0  ;;  %v1118_v60 = vpop.f32.mrb[4].mxu1 }
  0xf6   : > { %516 = vst.msk [vmem:[%s1031_s22 + $0x20] sm:$0xff] %vm511_vm2, %v400_v41  ;;  %v552_v45 = vsel %vm511_vm2, %v400_v41, 0.0  ;;  %v622_v46 = vmul.f32 %v400_v41, %v400_v41  ;;  %v890_v47 = vpop.f32.mrb[6].mxu0  ;;  %534 = vst.msk [vmem:[%s1031_s22 + $0xb0] sm:$0xff] %vm511_vm2, %v1118_v60  ;;  %v1123_v63 = vpop.f32.mrb[5].mxu1 }
  0xf7   : > { %v553_v48 = vadd.f32 %v552_v45, %v551_v42  ;;  %v656_v49 = vadd.f32 %v655_v44, %v654_v40  ;;  %519 = vst.msk [vmem:[%s1031_s22 + $0x38] sm:$0xff] %vm511_vm2, %v890_v47  ;;  %v403_v50 = vpop.f32.mrb[7].mxu0  ;;  %v625_v58 = vmul.f32 %v890_v47, %v890_v47  ;;  %v661_v0 = vsel %vm511_vm2, %v624_v51, 0.0  ;;  %532 = vst.msk [vmem:[%s1031_s22 + $0xa0] sm:$0xff] %vm511_vm2, %v1123_v63  ;;  %v1130_v3 = vpop.f32.mrb[6].mxu1 }
  0xf8   : > { %v657_v52 = vsel %vm511_vm2, %v622_v46, 0.0  ;;  %517 = vst.msk [vmem:[%s1031_s22 + $0x28] sm:$0xff] %vm511_vm2, %v403_v50  ;;  %v554_v53 = vsel %vm511_vm2, %v403_v50, 0.0  ;;  %v623_v54 = vmul.f32 %v403_v50, %v403_v50  ;;  %v558_v1 = vsel %vm511_vm2, %v890_v47, 0.0  ;;  %535 = vst.msk [vmem:[%s1031_s22 + $0xb8] sm:$0xff] %vm511_vm2, %v1130_v3  ;;  %v1137_v7 = vpop.f32.mrb[7].mxu1 }
  0xf9   : > { %v658_v55 = vadd.f32 %v657_v52, %v656_v49  ;;  %v555_v56 = vadd.f32 %v554_v53, %v553_v48  ;;  %v663_v8 = vsel %vm511_vm2, %v625_v58, 0.0  ;;  %533 = vst.msk [vmem:[%s1031_s22 + $0xa8] sm:$0xff] %vm511_vm2, %v1137_v7 }
  0xfa   : > { %v659_v59 = vsel %vm511_vm2, %v623_v54, 0.0 }
  0xfb   : > { %v557_v61 = vadd.f32 %v556_v57, %v555_v56  ;;  %v660_v62 = vadd.f32 %v659_v59, %v658_v55  ;;  %v634_v56 = vmul.f32 %v1087_v35, %v1087_v35 }
  0xfc   : > { %v893_v2 = vpop.f32.mrb[8].mxu0 }
  0xfd   : > { %v662_v4 = vadd.f32 %v661_v0, %v660_v62  ;;  %522 = vst.msk [vmem:[%s1031_s22 + $0x50] sm:$0xff] %vm511_vm2, %v893_v2  ;;  %v416_v5 = vpop.f32.mrb[9].mxu0  ;;  %v559_v6 = vadd.f32 %v558_v1, %v557_v61  ;;  %v628_v15 = vmul.f32 %v893_v2, %v893_v2  ;;  %v564_v21 = vsel %vm511_vm2, %v893_v2, 0.0  ;;  %v1154_v24 = vpop.f32.mrb[8].mxu1 }
  0xfe   : > { %520 = vst.msk [vmem:[%s1031_s22 + $0x40] sm:$0xff] %vm511_vm2, %v416_v5  ;;  %v560_v9 = vsel %vm511_vm2, %v416_v5, 0.0  ;;  %v626_v10 = vmul.f32 %v416_v5, %v416_v5  ;;  %v894_v11 = vpop.f32.mrb[10].mxu0  ;;  %538 = vst.msk [vmem:[%s1031_s22 + $0xd0] sm:$0xff] %vm511_vm2, %v1154_v24  ;;  %v1159_v27 = vpop.f32.mrb[9].mxu1  ;;  %v576_v1 = vsel %vm511_vm2, %v1087_v35, 0.0  ;;  %v635_v35 = vmul.f32 %v1101_v43, %v1101_v43 }
  0xff   : > { %v561_v12 = vadd.f32 %v560_v9, %v559_v6  ;;  %v664_v13 = vadd.f32 %v663_v8, %v662_v4  ;;  %523 = vst.msk [vmem:[%s1031_s22 + $0x58] sm:$0xff] %vm511_vm2, %v894_v11  ;;  %v419_v14 = vpop.f32.mrb[11].mxu0  ;;  %v629_v22 = vmul.f32 %v894_v11, %v894_v11  ;;  %v669_v28 = vsel %vm511_vm2, %v628_v15, 0.0  ;;  %536 = vst.msk [vmem:[%s1031_s22 + $0xc0] sm:$0xff] %vm511_vm2, %v1159_v27  ;;  %v1166_v31 = vpop.f32.mrb[10].mxu1 }
 0x100   : > { %v665_v16 = vsel %vm511_vm2, %v626_v10, 0.0  ;;  %521 = vst.msk [vmem:[%s1031_s22 + $0x48] sm:$0xff] %vm511_vm2, %v419_v14  ;;  %v562_v17 = vsel %vm511_vm2, %v419_v14, 0.0  ;;  %v627_v18 = vmul.f32 %v419_v14, %v419_v14  ;;  %v566_v29 = vsel %vm511_vm2, %v894_v11, 0.0  ;;  %539 = vst.msk [vmem:[%s1031_s22 + $0xd8] sm:$0xff] %vm511_vm2, %v1166_v31  ;;  %v1173_v37 = vpop.f32.mrb[11].mxu1 }
 0x101   : > { %v666_v19 = vadd.f32 %v665_v16, %v664_v13  ;;  %v563_v20 = vadd.f32 %v562_v17, %v561_v12  ;;  %v671_v38 = vsel %vm511_vm2, %v629_v22, 0.0  ;;  %537 = vst.msk [vmem:[%s1031_s22 + $0xc8] sm:$0xff] %vm511_vm2, %v1173_v37  ;;  %v681_v10 = vsel %vm511_vm2, %v634_v56, 0.0 }
 0x102   : > { %v667_v23 = vsel %vm511_vm2, %v627_v18, 0.0  ;;  %v636_v14 = vmul.f32 %v1082_v32, %v1082_v32  ;;  %v578_v15 = vsel %vm511_vm2, %v1101_v43, 0.0  ;;  %v580_v18 = vsel %vm511_vm2, %v1082_v32, 0.0 }
 0x103   : > { %v565_v25 = vadd.f32 %v564_v21, %v563_v20  ;;  %v668_v26 = vadd.f32 %v667_v23, %v666_v19  ;;  %v637_v19 = vmul.f32 %v1094_v39, %v1094_v39  ;;  %v683_v20 = vsel %vm511_vm2, %v635_v35, 0.0 }
 0x104   : > { %v897_v30 = vpop.f32.mrb[12].mxu0  ;;  %v638_v21 = vmul.f32 %v1123_v63, %v1123_v63  ;;  %v582_v43 = vsel %vm511_vm2, %v1094_v39, 0.0  ;;  %v586_v39 = vsel %vm511_vm2, %v1137_v7, 0.0  ;;  %v644_v56 = vmul.f32 %v1154_v24, %v1154_v24 }
 0x105   : > { %v670_v33 = vadd.f32 %v669_v28, %v668_v26  ;;  %526 = vst.msk [vmem:[%s1031_s22 + $0x70] sm:$0xff] %vm511_vm2, %v897_v30  ;;  %v432_v34 = vpop.f32.mrb[13].mxu0  ;;  %v567_v36 = vadd.f32 %v566_v29, %v565_v25  ;;  %v632_v47 = vmul.f32 %v897_v30, %v897_v30  ;;  %v572_v53 = vsel %vm511_vm2, %v897_v30, 0.0  ;;  %v1192_v57 = vpop.f32.mrb[12].mxu1 }
 0x106   : > { %524 = vst.msk [vmem:[%s1031_s22 + $0x60] sm:$0xff] %vm511_vm2, %v432_v34  ;;  %v568_v40 = vsel %vm511_vm2, %v432_v34, 0.0  ;;  %v630_v41 = vmul.f32 %v432_v34, %v432_v34  ;;  %v898_v42 = vpop.f32.mrb[14].mxu0  ;;  %542 = vst.msk [vmem:[%s1031_s22 + $0xf0] sm:$0xff] %vm511_vm2, %v1192_v57  ;;  %v1197_v61 = vpop.f32.mrb[13].mxu1  ;;  %v685_v25 = vsel %vm511_vm2, %v636_v14, 0.0 }
 0x107   : > { %v569_v44 = vadd.f32 %v568_v40, %v567_v36  ;;  %v672_v45 = vadd.f32 %v671_v38, %v670_v33  ;;  %527 = vst.msk [vmem:[%s1031_s22 + $0x78] sm:$0xff] %vm511_vm2, %v898_v42  ;;  %v435_v46 = vpop.f32.mrb[15].mxu0  ;;  %v633_v54 = vmul.f32 %v898_v42, %v898_v42  ;;  %v677_v62 = vsel %vm511_vm2, %v632_v47, 0.0  ;;  %540 = vst.msk [vmem:[%s1031_s22 + $0xe0] sm:$0xff] %vm511_vm2, %v1197_v61  ;;  %v1206_v2 = vpop.f32.mrb[14].mxu1 }
 0x108   : > { %v673_v48 = vsel %vm511_vm2, %v630_v41, 0.0  ;;  %525 = vst.msk [vmem:[%s1031_s22 + $0x68] sm:$0xff] %vm511_vm2, %v435_v46  ;;  %v570_v49 = vsel %vm511_vm2, %v435_v46, 0.0  ;;  %v631_v50 = vmul.f32 %v435_v46, %v435_v46  ;;  %v574_v0 = vsel %vm511_vm2, %v898_v42, 0.0  ;;  %543 = vst.msk [vmem:[%s1031_s22 + $0xf8] sm:$0xff] %vm511_vm2, %v1206_v2  ;;  %v1213_v8 = vpop.f32.mrb[15].mxu1 }
 0x109   : > { %v674_v51 = vadd.f32 %v673_v48, %v672_v45  ;;  %v571_v52 = vadd.f32 %v570_v49, %v569_v44  ;;  %v649_v6 = vmul.f32 %v1206_v2, %v1206_v2  ;;  %v679_v9 = vsel %vm511_vm2, %v633_v54, 0.0  ;;  %541 = vst.msk [vmem:[%s1031_s22 + $0xe8] sm:$0xff] %vm511_vm2, %v1213_v8 }
 0x10a   : > { %v675_v55 = vsel %vm511_vm2, %v631_v50, 0.0  ;;  %v584_v26 = vsel %vm511_vm2, %v1123_v63, 0.0  ;;  %v687_v29 = vsel %vm511_vm2, %v637_v19, 0.0  ;;  %v689_v30 = vsel %vm511_vm2, %v638_v21, 0.0 }
 0x10b   : > { %v573_v58 = vadd.f32 %v572_v53, %v571_v52  ;;  %v676_v59 = vadd.f32 %v675_v55, %v674_v51  ;;  %v1223_v13 = vsel %vm511_vm2, %v649_v6, 0.0  ;;  %v639_v33 = vmul.f32 %v1137_v7, %v1137_v7 }
 0x10c   : > { %v640_v38 = vmul.f32 %v1118_v60, %v1118_v60  ;;  %v588_v63 = vsel %vm511_vm2, %v1118_v60, 0.0  ;;  %v641_v42 = vmul.f32 %v1130_v3, %v1130_v3  ;;  %v642_v45 = vmul.f32 %v1159_v27, %v1159_v27 }
 0x10d   : > { %v678_v4 = vadd.f32 %v677_v62, %v676_v59  ;;  %v575_v5 = vadd.f32 %v574_v0, %v573_v58  ;;  %v691_v44 = vsel %vm511_vm2, %v639_v33, 0.0  ;;  %v590_v7 = vsel %vm511_vm2, %v1130_v3, 0.0 }
 0x10e   : > { %v693_v48 = vsel %vm511_vm2, %v640_v38, 0.0  ;;  %v592_v49 = vsel %vm511_vm2, %v1159_v27, 0.0  ;;  %v695_v51 = vsel %vm511_vm2, %v641_v42, 0.0  ;;  %v697_v52 = vsel %vm511_vm2, %v642_v45, 0.0  ;;  %v544_v38 = vld [vmem:[#allocation2] sm:$0x1] }
 0x10f   : > { %v577_v11 = vadd.f32 %v576_v1, %v575_v5  ;;  %v680_v12 = vadd.f32 %v679_v9, %v678_v4  ;;  %v643_v53 = vmul.f32 %v1173_v37, %v1173_v37  ;;  %v594_v3 = vsel %vm511_vm2, %v1173_v37, 0.0 }
 0x110   : > { %v596_v27 = vsel %vm511_vm2, %v1154_v24, 0.0  ;;  %v645_v62 = vmul.f32 %v1166_v31, %v1166_v31  ;;  %v646_v1 = vmul.f32 %v1197_v61, %v1197_v61  ;;  %v701_v6 = vsel %vm511_vm2, %v644_v56, 0.0 }
 0x111   : > { %v682_v16 = vadd.f32 %v681_v10, %v680_v12  ;;  %v579_v17 = vadd.f32 %v578_v15, %v577_v11  ;;  %v699_v0 = vsel %vm511_vm2, %v643_v53, 0.0  ;;  %v598_v37 = vsel %vm511_vm2, %v1166_v31, 0.0 }
 0x112   : > { %v600_v9 = vsel %vm511_vm2, %v1197_v61, 0.0  ;;  %v703_v35 = vsel %vm511_vm2, %v645_v62, 0.0  ;;  %v705_v11 = vsel %vm511_vm2, %v646_v1, 0.0  ;;  %v647_v12 = vmul.f32 %v1213_v8, %v1213_v8 }
 0x113   : > { %v581_v22 = vadd.f32 %v580_v18, %v579_v17  ;;  %v684_v23 = vadd.f32 %v683_v20, %v682_v16  ;;  %v648_v16 = vmul.f32 %v1192_v57, %v1192_v57  ;;  %v602_v31 = vsel %vm511_vm2, %v1213_v8, 0.0 }
 0x114   : > { %v604_v61 = vsel %vm511_vm2, %v1192_v57, 0.0  ;;  %v707_v19 = vsel %vm511_vm2, %v647_v12, 0.0 }
 0x115   : > { %v686_v28 = vadd.f32 %v685_v25, %v684_v23  ;;  %v583_v32 = vadd.f32 %v582_v43, %v581_v22  ;;  %v709_v22 = vsel %vm511_vm2, %v648_v16, 0.0  ;;  %v606_v23 = vsel %vm511_vm2, %v1206_v2, 0.0 }
 0x117   : > { %v585_v34 = vadd.f32 %v584_v26, %v583_v32  ;;  %v688_v36 = vadd.f32 %v687_v29, %v686_v28 }
 0x119   : > { %v690_v40 = vadd.f32 %v689_v30, %v688_v36  ;;  %v587_v41 = vadd.f32 %v586_v39, %v585_v34 }
 0x11b   : > { %v589_v46 = vadd.f32 %v588_v63, %v587_v41  ;;  %v692_v47 = vadd.f32 %v691_v44, %v690_v40  ;;  %v617_v41 = vld [vmem:[#allocation3] sm:$0x1] }
 0x11d   : > { %v694_v50 = vadd.f32 %v693_v48, %v692_v47  ;;  %v591_v60 = vadd.f32 %v590_v7, %v589_v46 }
 0x11f   : > { %v593_v54 = vadd.f32 %v592_v49, %v591_v60  ;;  %v696_v55 = vadd.f32 %v695_v51, %v694_v50 }
 0x121   : > { %v698_v58 = vadd.f32 %v697_v52, %v696_v55  ;;  %v595_v59 = vadd.f32 %v594_v3, %v593_v54 }
 0x123   : > { %v597_v4 = vadd.f32 %v596_v27, %v595_v59  ;;  %v700_v5 = vadd.f32 %v699_v0, %v698_v58 }
 0x125   : > { %v702_v10 = vadd.f32 %v701_v6, %v700_v5  ;;  %v599_v24 = vadd.f32 %v598_v37, %v597_v4 }
 0x127   : > { %v601_v14 = vadd.f32 %v600_v9, %v599_v24  ;;  %v704_v15 = vadd.f32 %v703_v35, %v702_v10 }
 0x129   : > { %v706_v17 = vadd.f32 %v705_v11, %v704_v15  ;;  %v603_v18 = vadd.f32 %v602_v31, %v601_v14 }
 0x12b   : > { %v605_v20 = vadd.f32 %v604_v61, %v603_v18  ;;  %v708_v21 = vadd.f32 %v707_v19, %v706_v17 }
 0x12d   : > { %v607_v25 = vadd.f32 %v606_v23, %v605_v20  ;;  %v710_v43 = vadd.f32 %v709_v22, %v708_v21 }
 0x12f   : > { %v608_v26 = vrot.slane %v607_v25, 4  ;;  %v712_v28 = vadd.f32 %v1223_v13, %v710_v43 }
 0x131   : > { %v609_v8 = vadd.f32 %v608_v26, %v607_v25  ;;  %v713_v32 = vrot.slane %v712_v28, 4 }
 0x133   : > { %v610_v29 = vrot.slane %v609_v8, 2  ;;  %v714_v30 = vadd.f32 %v713_v32, %v712_v28 }
 0x135   : > { %v611_v33 = vadd.f32 %v610_v29, %v609_v8  ;;  %v715_v57 = vrot.slane %v714_v30, 2 }
 0x137   : > { %v612_v34 = vrot.slane %v611_v33, 1  ;;  %v716_v36 = vadd.f32 %v715_v57, %v714_v30 }
 0x139   : > { %v613_v39 = vadd.f32 %v612_v34, %v611_v33  ;;  %v717_v40 = vrot.slane %v716_v36, 1  ;;  %724 = sbr.rel (%p859_p5) target bundleno = 347 (0x15b), region = 36 }
 0x13b   : > { %v614_v63 = vadd.f32 %v613_v39, %v544_v38  ;;  %v718_v2 = vadd.f32 %v717_v40, %v716_v36 }
 0x13d   : > { %616 = vst.msk [vmem:[#allocation2] sm:$0x1] %vm615_vm3, %v614_v63  ;;  %v719_v42 = vadd.f32 %v718_v2, %v617_v41 }
 0x13f   : > { %720 = vst.msk [vmem:[#allocation3] sm:$0x1] %vm615_vm3, %v719_v42 }
 0x144   : > { %v725_v13 = vld [vmem:[#allocation2] sm:$0x1] }
 0x145   : > { %v726_v45 = vmul.f32 0.001953125, %v725_v13 }
 0x146   : > { %v727_v44 = vld [vmem:[#allocation3] sm:$0x1] }
 0x147   : > { %v728_v46 = vmul.f32 0.001953125, %v727_v44  ;;  %v729_v47 = vmul.f32 %v726_v45, %v726_v45  ;;  %732 = vst.msk [vmem:[#allocation4] sm:$0x1] %vm615_vm3, %v726_v45 }
 0x149   : > { %v730_v48 = vsub.f32 %v728_v46, %v729_v47 }
 0x14b   : > { %v731_v7 = vmax.f32 %v730_v48, 0.0 }
 0x14d   : > { %v733_v49 = vadd.f32 1e-05, %v731_v7 }
 0x14f   : > { %950 = vrsqrt.f32 %v733_v49 }
 0x159   : > { %v951_v50 = vpop.eup %950 }
 0x15a   : > { %735 = vst.msk [vmem:[#allocation4 + $0x1] sm:$0x1] %vm615_vm3, %v951_v50 }
 0x15b PF: > { %p921_p6 = scmp.eq.s32.totalorder %s1018_s13, 1  ;;  %s991_s25 = smov [#allocation4]  }
 0x15c   : > { %s752_s26 = sshll.u32 %s991_s25, 4  ;;  %s753_s26 = int_to_ptr.vmem [resolvable:$true] %s752_s26 }
 0x15d   : > { %s952_s27 = scalar_lea.vmem %s753_s26, 32  ;;  %p959_p10 = scmp.lt.s32.totalorder %s753_s26, %s753_s26 }
 0x15e   : > { %p953_p7 = scmp.ne.s32.totalorder %s753_s26, %s952_s27  ;;  %p960_p11 = scmp.lt.s32.totalorder %s952_s27, %s952_s27 }
 0x160   : > { %p954_p8 = pnand %p953_p7, %p921_p6  ;;  %p961_p12 = por %p960_p11, %p959_p10 }
 0x162   : > { %p955_p9 = pneg %p954_p8 }
 0x164   : > { %p962_p13 = pnand %p961_p12, %p955_p9 }
 0x166   : > { %965 = shalt.err (!%p962_p13)
}
 0x167   : > { %s966_s30 = scalar_lea.hbm %s1330_s3, 32 }
 0x168   : > { %p967_p0 = scmp.ne.s32.totalorder %s1330_s3, %s966_s30  ;;  %p972_p3 = scmp.lt.u32.totalorder %s966_s30, %s1330_s3 }
 0x16a   : > { %p968_p1 = pnand %p967_p0, %p921_p6 }
 0x16c   : > { %p969_p2 = pneg %p968_p1 }
 0x16e   : > { %p974_p4 = pnand %p972_p3, %p969_p2 }
 0x170   : > { %977 = shalt.err (!%p974_p4)
}
 0x171   : > { %918 = dma.vmem_to_hbm [thread:$0]  (%p921_p6), %s753_s26, 32, %s1330_s3, [#allocation5]  }
 0x172   : > { %983 = dma.done.wait (%p921_p6), [#allocation5], 32  }
 0x173   : > { %985 = vsyncadd (%p921_p6), [#allocation5], 4294967264 }
 0x174 PF: > { %s15_s12 = sadd.s32 1, %s988_s12  }
 0x175   : > { %p12_p5 = scmp.ge.s32.totalorder %s15_s12, 4  }
 0x177   :  { %14 = sbr.rel (!%p12_p5) target bundleno = 1 (0x1), region = 75 }
 0x17e   :  { %773 = vsyncpa [#allocation5], 1 }
 0x17f   :  { %775 = vsyncpa [#allocation5 + $0x1], 1 }

</bundles_post_ra>
